<compile_context>
chip_gen: v7x
topology: tpu7x:2x2x1
jax: 0.10.0
libtpu: 0.0.40
codegen_flags: <defaults>
</compile_context>

<pallas_src>
import jax
import jax.numpy as jnp
from jax import lax
from jax.experimental import pallas as pl
from jax.experimental.pallas import tpu as pltpu


def linear_kernel(x_ref, w_ref, b_ref, o_ref):
    # x_ref: (TB, C)    VMEM tile, streamed over the batch grid (lane-dense)
    # w_ref: (R,  C)    VMEM tile, resident across the grid (R = pack or 1)
    # b_ref: (1,)       SMEM scalar bias
    # o_ref: (R, TB)    lane-dense output tile (batch along lanes)
    out = lax.dot_general(
        w_ref[...], x_ref[...],
        dimension_numbers=(((1,), (1,)), ((), ())),   # w @ x^T -> (R, TB)
        preferred_element_type=jnp.float32,
    )
    o_ref[...] = (out + b_ref[0]).astype(o_ref.dtype)


def _choose_tile(rows, row_bytes, budget_bytes):
    """Pick a sublane tile for `rows` rows of `row_bytes` bytes each.

    Returns (tile, rows_padded, num_grid_steps).  Multi-tile cases use a tile
    that is a multiple of 128 (so the lane-dense output block is unmasked) and
    that exactly divides the padded row count.  Medium row counts get >= 2 grid
    steps so both v7x TensorCores are used.
    """
    if rows <= 256:
        tile = max(8, ((rows + 7) // 8) * 8)          # single (full) tile
        return tile, tile, 1
    max_tile = max(128, (budget_bytes // row_bytes) // 128 * 128)
    half = (((rows + 1) // 2) + 127) // 128 * 128     # ~rows/2, lane aligned
    tile = min(max_tile, half)
    rows_padded = ((rows + tile - 1) // tile) * tile
    return tile, rows_padded, rows_padded // tile


def net_forward(x, weight, bias, *, vmem_budget_bytes=8 * 1024 * 1024):
    """Pallas equivalent of Net.forward.

    x: (B, F), weight: (1, F)  [PyTorch nn.Linear layout], bias: (1,).
    Returns (B, 1), matching PyTorch.
    """
    B, F = x.shape
    assert weight.shape == (1, F)
    LANES = 128
    itemsize = jnp.dtype(x.dtype).itemsize

    # Fold F into lanes when possible (F | 128): dense DMA, no lane padding.
    pack = LANES // F if (F <= LANES and LANES % F == 0) else 1

    if pack > 1:
        rows = -(-B // pack)                          # packed rows needed
        row_bytes = LANES * itemsize
        tile, rows_pad, nsteps = _choose_tile(rows, row_bytes, vmem_budget_bytes)
        b_pad = rows_pad * pack
        x_p = jnp.pad(x, ((0, b_pad - B), (0, 0))) if b_pad != B else x
        x_p = x_p.reshape(rows_pad, LANES)            # free row-major repack
        w_p = jnp.kron(jnp.eye(pack, dtype=weight.dtype), weight)  # (pack, 128)
    else:
        # Fallback for F that does not divide 128 (still lane-dense output).
        row_bytes = (-(-F // LANES)) * LANES * itemsize
        tile, rows_pad, nsteps = _choose_tile(B, row_bytes, vmem_budget_bytes)
        x_p = jnp.pad(x, ((0, rows_pad - B), (0, 0))) if rows_pad != B else x
        w_p = weight                                   # (1, F), natural shape

    w_rows, w_cols = w_p.shape
    b1 = bias.reshape(1).astype(jnp.float32)

    out = pl.pallas_call(
        linear_kernel,
        out_shape=jax.ShapeDtypeStruct((w_rows, rows_pad), x.dtype),
        grid=(nsteps,),
        in_specs=[
            pl.BlockSpec((tile, x_p.shape[1]), lambda i: (i, 0)),   # x: streamed
            pl.BlockSpec((w_rows, w_cols), lambda i: (0, 0)),       # w: resident
            pl.BlockSpec(memory_space=pltpu.MemorySpace.SMEM),      # bias scalar
        ],
        out_specs=pl.BlockSpec((w_rows, tile), lambda i: (0, i)),   # lane-dense
        compiler_params=pltpu.CompilerParams(
            dimension_semantics=("parallel",),
            vmem_limit_bytes=32 * 1024 * 1024,
        ),
        cost_estimate=pl.CostEstimate(
            flops=2 * rows_pad * x_p.shape[1] * w_rows,
            transcendentals=0,
            bytes_accessed=itemsize * (rows_pad * x_p.shape[1] + w_rows * w_cols)
                           + 4 * (1 + w_rows * rows_pad)),
    )(x_p, w_p, b1)

    # Un-interleave the (pack, rows_pad) slab back to original row order and
    # drop the padding rows (layout plumbing, free in the wrapper).
    return out.T.reshape(-1)[:B].reshape(B, 1)


if __name__ == "__main__":
    key = jax.random.PRNGKey(0)
    kx, kw, kb = jax.random.split(key, 3)

    batch = 2000            # not a multiple of the tile -> exercises padding
    num_feature = 32        # divides 128 -> exercises the lane-folded path

    # Deterministic parameter init (matches nn.Linear shapes: W (1, F), b (1,)).
    bound = 1.0 / jnp.sqrt(num_feature)
    weight = jax.random.uniform(kw, (1, num_feature), jnp.float32, -bound, bound)
    bias = jax.random.uniform(kb, (1,), jnp.float32, -bound, bound)

    x = jax.random.normal(kx, (batch, num_feature), jnp.float32)

    # Small VMEM budget so the demo exercises a multi-step grid (grid=(2,)).
    out = net_forward(x, weight, bias, vmem_budget_bytes=256 * 1024)
    out = jax.block_until_ready(out)

    # Pure-JAX reference check.
    ref = x @ weight.T + bias
    assert out.shape == (batch, 1)
    assert jnp.allclose(out, ref, atol=1e-5, rtol=1e-5)

    print("KERNEL_OK")
</pallas_src>

<mosaic_0001>
module attributes {stable_mosaic.version = 11 : i64} {
  func.func @linear_kernel(%arg0: i32, %arg1: memref<256x128xf32, #tpu.memory_space<vmem>>, %arg2: memref<4x128xf32, #tpu.memory_space<vmem>>, %arg3: memref<1xf32, #tpu.memory_space<smem>>, %arg4: memref<4x256xf32, #tpu.memory_space<vmem>>) attributes {dimension_semantics = [#tpu.dimension_semantics<parallel>], iteration_bounds = array<i64: 2>, scalar_prefetch = 0 : i64, scratch_operands = 0 : i64, tpu.core_type = #tpu.core_type<tc>, window_params = [{transform_indices = @transform_0, window_bounds = array<i64: 256, 128>}, {pipeline_mode = #tpu.pipeline_mode<synchronous>, transform_indices = @transform_1, window_bounds = array<i64: 4, 128>}, {transform_indices = @transform_2, window_bounds = array<i64: 1>}, {transform_indices = @transform_3, window_bounds = array<i64: 4, 256>}]} {
    %c0 = arith.constant 0 : index
    %c0_0 = arith.constant 0 : index
    %0 = vector.load %arg2[%c0, %c0_0] : memref<4x128xf32, #tpu.memory_space<vmem>>, vector<4x128xf32>
    %c0_1 = arith.constant 0 : index
    %c0_2 = arith.constant 0 : index
    %1 = vector.load %arg1[%c0_1, %c0_2] : memref<256x128xf32, #tpu.memory_space<vmem>>, vector<256x128xf32>
    %cst = arith.constant dense<0.000000e+00> : vector<4x256xf32>
    %2 = tpu.matmul %0, %1, %cst {dimension_numbers = #tpu.dot_dimension_numbers<[1], [1], [0], [0], [0, 0, 1, 0], [], []>} : vector<4x128xf32>, vector<256x128xf32>, vector<4x256xf32> -> vector<4x256xf32>
    %c0_3 = arith.constant 0 : index
    %3 = memref.load %arg3[%c0_3] : memref<1xf32, #tpu.memory_space<smem>>
    %4 = vector.broadcast %3 : f32 to vector<4x256xf32>
    %5 = arith.addf %2, %4 : vector<4x256xf32>
    %c0_4 = arith.constant 0 : index
    %c0_5 = arith.constant 0 : index
    %6 = vector.load %arg4[%c0_4, %c0_5] : memref<4x256xf32, #tpu.memory_space<vmem>>, vector<4x256xf32>
    tpu.vector_store %arg4[%c0_4, %c0_5], %5 {strides = array<i32>} : memref<4x256xf32, #tpu.memory_space<vmem>>, vector<4x256xf32>,
    return
  }
  func.func @transform_0(%arg0: i32) -> (i32, i32) {
    %c0_i32 = arith.constant 0 : i32
    %c0_i32_0 = arith.constant 0 : i32
    return %arg0, %c0_i32 : i32, i32
  }
  func.func @transform_1(%arg0: i32) -> (i32, i32) {
    %c0_i32 = arith.constant 0 : i32
    %c0_i32_0 = arith.constant 0 : i32
    %c0_i32_1 = arith.constant 0 : i32
    return %c0_i32, %c0_i32_0 : i32, i32
  }
  func.func @transform_2(%arg0: i32) -> i32 {
    %c0_i32 = arith.constant 0 : i32
    %c0_i32_0 = arith.constant 0 : i32
    return %c0_i32 : i32
  }
  func.func @transform_3(%arg0: i32) -> (i32, i32) {
    %c0_i32 = arith.constant 0 : i32
    %c0_i32_0 = arith.constant 0 : i32
    return %c0_i32, %arg0 : i32, i32
  }
}

</mosaic_0001>

<bundles_post_ra>
// kernel: tpu_custom_call.1
= control target key start
LH: loop header
LB: loop body
LE: loop exit
PB: predicated region body
PF: predicated region fallthrough
CT: control target
= control target key end

     0   :  { %s841_s0 = inlined_call_operand.hbm [shape: f32[512,128], index: 0, kind: input, shape index: {}]   ;;  %s842_s1 = inlined_call_operand.vmem [shape: f32[4,128], index: 1, kind: input, shape index: {}]   ;;  %s843_s2 = inlined_call_operand.<no memory space> [shape: f32[1], index: 2, kind: input, shape index: {}]   ;;  %s844_s3 = inlined_call_operand.hbm [shape: f32[4,512], index: 3, kind: output, shape index: {}]  }
   0x1   :  { %8 = sst [smem:[#allocation2]] %s843_s2 }
   0x2   :  { %9 = vsyncpa [#allocation4], 0 }
   0x3   :  { %11 = vsyncpa [#allocation4 + $0x1], 0 }
   0x4   :  { %12 = vsyncpa [#allocation5], 0 }
   0x5   :  { %14 = vsyncpa [#allocation5 + $0x1], 0  ;;  %s643_s14 = smov 0   ;;  %s645_s15 = smov 0  }
   0x6   :  { %s647_s16 = smov 0   ;;  %s649_s17 = smov 0  }
   0x7 LB: > { %s664_s2 = sadd.s32 4294967295, %s614_s17   ;;  %s388_s18 = sadd.s32 4294967294, %s614_s17   ;;  %s614_s17 = sphi %s649_s17, %s857_s17   ;;  %s610_s16 = sphi %s647_s16, %s856_s16   ;;  %s606_s15 = sphi %s645_s15, %s855_s15   ;;  %s602_s14 = sphi %s643_s14, %s854_s14  }
   0x8   : > { %s668_s19 = sadd.s32 1, %s614_s17   ;;  %s27_s20 = sadd.s32 1, %s610_s16 }
   0x9   : > { %s24_s21 = ssub.s32 %s614_s17, %s668_s19  ;;  %p34_p0 = scmp.ne.s32.totalorder %s610_s16, %s606_s15 }
   0xa   : > { %p25_p1 = scmp.eq.s32.totalorder %s24_s21, 0  ;;  %p35_p2 = scmp.eq.s32.totalorder %s614_s17, 0 }
   0xb   : > { %p40_p3 = scmp.ne.s32.totalorder %s606_s15, %s602_s14  ;;  %p41_p4 = scmp.eq.s32.totalorder %s664_s2, 0 }
   0xc   : > { %s680_s22 = scalar_select %p25_p1, %s610_s16, %s27_s20  }
   0xd   : > { %p682_p5 = por %p35_p2, %p34_p0  ;;  %p686_p6 = por %p41_p4, %p40_p3 }
   0xe   : > { %p106_p7 = scmp.eq.s32.totalorder %s664_s2, 1  ;;  %p112_p8 = scmp.eq.s32.totalorder %s388_s18, 1 }
   0xf   : > { %p482_p10 = scmp.lt.s32.totalorder %s614_s17, 2  ;;  %s138_s27 = sand.u32 1, %s610_s16  }
  0x10   : > { %p693_p11 = por %p106_p7, %p34_p0  ;;  %p697_p12 = por %p112_p8, %p40_p3 }
  0x11   : > { %s402_s28 = sshll.u32 %s614_s17, 12  ;;  %s391_s29 = sshll.u32 %s138_s27, 8 }
  0x12   : > { %s848_s25 = scalar_select %p693_p11, 1, 0 }
  0x13   : > { %s849_s26 = scalar_select %p697_p12, 1, 0 }
  0x14   : > { %s706_s5 = scalar_lea.hbm %s841_s0, %s402_s28  ;;  %s142_s6 = scalar_lea.vmem [#allocation3], %s391_s29 }
  0x15   : > { %s149_s7 = sshll.u32 %s142_s6, 4  ;;  %p710_p13 = pnand %p482_p10, %p682_p5  ;;  %s714_s7 = int_to_ptr.vmem [resolvable:$true] %s149_s7 }
  0x16   : > { %s716_s9 = scalar_lea.sflag [#allocation4], %s138_s27  ;;  %s518_s10 = scalar_lea.hbm %s706_s5, 4096 }
  0x17   : > { %p519_p0 = scmp.ne.s32.totalorder %s706_s5, %s518_s10  ;;  %p520_p1 = pneg %p710_p13 }
  0x18   : > { %s523_s13 = scalar_lea.hbm %s841_s0, 8192  ;;  %p524_p4 = scmp.lt.u32.totalorder %s706_s5, %s841_s0 }
  0x19   : > { %p521_p2 = pnand %p520_p1, %p519_p0  ;;  %p525_p5 = scmp.lt.u32.totalorder %s523_s13, %s518_s10 }
  0x1a   : > { %p527_p8 = scmp.lt.u32.totalorder %s518_s10, %s706_s5 }
  0x1b   : > { %p522_p3 = pneg %p521_p2  ;;  %p526_p7 = por %p525_p5, %p524_p4 }
  0x1d   : > { %p528_p10 = por %p527_p8, %p526_p7 }
  0x1f   : > { %p529_p9 = pnand %p528_p10, %p522_p3 }
  0x21   : > { %532 = shalt.err (!%p529_p9)
}
  0x22   : > { %s533_s21 = scalar_lea.vmem %s714_s7, 4096  ;;  %s616_s23 = smov [#allocation3]  }
  0x23   : > { %p534_p0 = scmp.ne.s32.totalorder %s714_s7, %s533_s21  ;;  %s538_s27 = sshll.u32 %s616_s23, 4  ;;  %s539_s27 = int_to_ptr.vmem [resolvable:$false] %s538_s27 }
  0x24   : > { %s540_s28 = scalar_lea.vmem %s539_s27, 8192  ;;  %p541_p11 = scmp.lt.s32.totalorder %s714_s7, %s539_s27 }
  0x25   : > { %p536_p2 = pnand %p534_p0, %p520_p1  ;;  %p542_p4 = scmp.lt.s32.totalorder %s540_s28, %s533_s21 }
  0x27   : > { %p537_p12 = pneg %p536_p2  ;;  %p543_p5 = por %p542_p4, %p541_p11 }
  0x29   : > { %p544_p7 = pnand %p543_p5, %p537_p12 }
  0x2b   : > { %547 = shalt.err (!%p544_p7)
}
  0x2c   : > { %s617_s29 = smov 128   ;;  %s618_s30 = smov 8  }
  0x2d   : > { %477 = dma.hbm_to_vmem [thread:$0]  (!%p710_p13), %s706_s5, 4096, %s714_s7, %s716_s9, %s617_s29, %s617_s29, %s618_s30  }
  0x2e   : > { %p394_p9 = scmp.ge.s32.totalorder %s614_s17, 1  ;;  %p157_p1 = scmp.lt.s32.totalorder %s614_s17, 3 }
  0x30   : > { %p158_p3 = pnand %p394_p9, %p157_p1 }
  0x31   : > { %s747_s4 = sand.u32 (!%p158_p3), 1, %s606_s15  }
  0x32   : > { %161 = sbr.rel (%p158_p3) target bundleno = 356 (0x164), region = 32  ;;  %s395_s6 = sshll.u32 (!%p158_p3), %s747_s4, 8 }
  0x33   : > { %s164_s10 = scalar_lea.sflag (!%p158_p3), [#allocation4], %s747_s4  ;;  %s751_s11 = scalar_lea.vmem (!%p158_p3), [#allocation3], %s395_s6 }
  0x39   : > { %593 = dma.done.wait (%p686_p6), %s164_s10, 4096  }
  0x3a   : > { %595 = vsyncadd (%p686_p6), %s164_s10, 4294963200  ;;  %v209_v0 = vld [vmem:[%s751_s11 + $0x80] sm:$0xff]  ;;  %v210_v1 = vld [vmem:[%s751_s11 + $0x88] sm:$0xff]  ;;  %s225_s7 = sld [smem:[#allocation2]]  ;;  %s396_s8 = sshll.u32 %s747_s4, 3 }
  0x3b   : > { %v193_v2 = vld [vmem:[%s751_s11] sm:$0xff]  ;;  %v438_v3 = vpack.c.bf16 %v210_v1, %v209_v0  ;;  %v194_v4 = vld [vmem:[%s751_s11 + $0x8] sm:$0xff]  ;;  %v211_v5 = vld [vmem:[%s751_s11 + $0x90] sm:$0xff]  ;;  %s403_s9 = sshll.u32 %s664_s2, 7  ;;  %s189_s12 = scalar_lea.vmem [#allocation6], %s396_s8 }
  0x3c   : > { %v212_v6 = vld [vmem:[%s751_s11 + $0x98] sm:$0xff]  ;;  %v440_v7 = vpack.c.bf16 %v194_v4, %v193_v2  ;;  %v195_v9 = vld [vmem:[%s751_s11 + $0x10] sm:$0xff]  ;;  %v213_v11 = vld [vmem:[%s751_s11 + $0xa0] sm:$0xff]  ;;  %s318_s13 = sshll.u32 %s189_s12, 4  ;;  %s797_s21 = scalar_lea.hbm %s844_s3, %s403_s9  ;;  %s799_s13 = int_to_ptr.vmem [resolvable:$true] %s318_s13 }
  0x3d   : > { %v442_v8 = vpack.c.bf16 %v212_v6, %v211_v5  ;;  %439 = vmatprep.subr.bf16.mxu0 %v438_v3  ;;  %v196_v10 = vld [vmem:[%s751_s11 + $0x18] sm:$0xff]  ;;  %v214_v12 = vld [vmem:[%s751_s11 + $0xa8] sm:$0xff]  ;;  %v192_v15 = vld [vmem:[%s842_s1] sm:$0xf]  ;;  %s304_s23 = scalar_lea.sflag [#allocation5], %s747_s4  ;;  %s548_s27 = scalar_lea.vmem %s799_s13, 128 }
  0x3e   : > { %441 = vmatpush3.bf16.xpose.msra.mxu0 %v440_v7  ;;  %v444_v13 = vpack.c.bf16 %v196_v10, %v195_v9  ;;  %v446_v14 = vpack.c.bf16 %v214_v12, %v213_v11  ;;  %436 = vmatprep.mubr.f32.mxu0 %v192_v15  ;;  %v197_v16 = vld [vmem:[%s751_s11 + $0x20] sm:$0xff]  ;;  %v198_v17 = vld [vmem:[%s751_s11 + $0x28] sm:$0xff]  ;;  %v215_v18 = vld [vmem:[%s751_s11 + $0xb0] sm:$0xff]  ;;  %p549_p6 = scmp.ne.s32.totalorder %s799_s13, %s548_s27  ;;  %p851_p11 = scmp.ne.s32.totalorder %s848_s25, 0 }
  0x3f   : > { %443 = vmatprep.subr.bf16.mxu0 %v442_v8  ;;  %v216_v19 = vld [vmem:[%s751_s11 + $0xb8] sm:$0xff]  ;;  %v448_v20 = vpack.c.bf16 %v198_v17, %v197_v16  ;;  %v199_v22 = vld [vmem:[%s751_s11 + $0x30] sm:$0xff]  ;;  %v217_v24 = vld [vmem:[%s751_s11 + $0xc0] sm:$0xff]  ;;  %s619_s2 = smov [#allocation6]  }
  0x40   : > { %v450_v21 = vpack.c.bf16 %v216_v19, %v215_v18  ;;  %v200_v23 = vld [vmem:[%s751_s11 + $0x38] sm:$0xff]  ;;  %v218_v25 = vld [vmem:[%s751_s11 + $0xc8] sm:$0xff]  ;;  %v201_v28 = vld [vmem:[%s751_s11 + $0x40] sm:$0xff]  ;;  %v226_v49 = vstv %s225_s7  ;;  %p550_p12 = pnand %p549_p6, %p851_p11  ;;  %s552_s28 = sshll.u32 %s619_s2, 4  ;;  %s553_s28 = int_to_ptr.vmem [resolvable:$false] %s552_s28 }
  0x41   : > { %v452_v26 = vpack.c.bf16 %v200_v23, %v199_v22  ;;  %v454_v27 = vpack.c.bf16 %v218_v25, %v217_v24  ;;  %v202_v29 = vld [vmem:[%s751_s11 + $0x48] sm:$0xff]  ;;  %v219_v30 = vld [vmem:[%s751_s11 + $0xd0] sm:$0xff]  ;;  %v220_v31 = vld [vmem:[%s751_s11 + $0xd8] sm:$0xff]  ;;  %s554_s29 = scalar_lea.vmem %s553_s28, 256  ;;  %p555_p8 = scmp.lt.s32.totalorder %s799_s13, %s553_s28 }
  0x42   : > { %v456_v32 = vpack.c.bf16 %v202_v29, %v201_v28  ;;  %v458_v33 = vpack.c.bf16 %v220_v31, %v219_v30  ;;  %v203_v34 = vld [vmem:[%s751_s11 + $0x50] sm:$0xff]  ;;  %v204_v35 = vld [vmem:[%s751_s11 + $0x58] sm:$0xff]  ;;  %v221_v36 = vld [vmem:[%s751_s11 + $0xe0] sm:$0xff]  ;;  %p551_p13 = pneg %p550_p12  ;;  %p556_p10 = scmp.lt.s32.totalorder %s554_s29, %s548_s27 }
  0x43   : > { %v222_v37 = vld [vmem:[%s751_s11 + $0xe8] sm:$0xff]  ;;  %v460_v38 = vpack.c.bf16 %v204_v35, %v203_v34  ;;  %v205_v40 = vld [vmem:[%s751_s11 + $0x60] sm:$0xff]  ;;  %v223_v42 = vld [vmem:[%s751_s11 + $0xf0] sm:$0xff] }
  0x44   : > { %v462_v39 = vpack.c.bf16 %v222_v37, %v221_v36  ;;  %v206_v41 = vld [vmem:[%s751_s11 + $0x68] sm:$0xff]  ;;  %v224_v43 = vld [vmem:[%s751_s11 + $0xf8] sm:$0xff]  ;;  %v207_v46 = vld [vmem:[%s751_s11 + $0x70] sm:$0xff]  ;;  %p557_p0 = por %p556_p10, %p555_p8 }
  0x45   : > { %v464_v44 = vpack.c.bf16 %v206_v41, %v205_v40  ;;  %v466_v45 = vpack.c.bf16 %v224_v43, %v223_v42  ;;  %v208_v47 = vld [vmem:[%s751_s11 + $0x78] sm:$0xff] }
  0x46   : > { %445 = vmatpush3.bf16.xpose.msra.mxu0 %v444_v13  ;;  %v468_v48 = vpack.c.bf16 %v208_v47, %v207_v46  ;;  %p558_p2 = pnand %p557_p0, %p551_p13 }
  0x47   : > { %447 = vmatprep.subr.bf16.mxu0 %v446_v14 }
  0x4e   : > { %449 = vmatpush3.bf16.xpose.msra.mxu0 %v448_v20 }
  0x4f   : > { %451 = vmatprep.subr.bf16.mxu0 %v450_v21 }
  0x56   : > { %453 = vmatpush3.bf16.xpose.msra.mxu0 %v452_v26 }
  0x57   : > { %455 = vmatprep.subr.bf16.mxu0 %v454_v27 }
  0x5e   : > { %457 = vmatpush3.bf16.xpose.msra.mxu0 %v456_v32 }
  0x5f   : > { %459 = vmatprep.subr.bf16.mxu0 %v458_v33 }
  0x66   : > { %461 = vmatpush3.bf16.xpose.msra.mxu0 %v460_v38 }
  0x67   : > { %463 = vmatprep.subr.bf16.mxu0 %v462_v39 }
  0x6e   : > { %465 = vmatpush3.bf16.xpose.msra.mxu0 %v464_v44 }
  0x6f   : > { %467 = vmatprep.subr.bf16.mxu0 %v466_v45 }
  0x76   : > { %469 = vmatpush3.bf16.xpose.msra.mxu0 %v468_v48 }
  0x7d   : > { %437 = vmatmul.mubr.f32.vlgmr.msra.gmra.mrb[0].mxu0 %v192_v15 }
 0x150   : > { %v293_v50 = vpop.f32.mrb[0].mxu0 }
 0x151   : > { %v294_v51 = vadd.f32 %v293_v50, %v226_v49  ;;  %v295_v52 = vpop.f32.mrb[1].mxu0 }
 0x152   : > { %v296_v53 = vadd.f32 %v295_v52, %v226_v49 }
 0x154   : > { %v300_v54 = vcombine.low %v294_v51, %v296_v53 }
 0x156   : > { %302 = vst [vmem:[%s189_s12] sm:$0xff] %v300_v54 }
 0x157   : > { %561 = shalt.err (!%p558_p2)
}
 0x158   : > { %s562_s30 = scalar_lea.hbm %s797_s21, 128  ;;  %s566_s10 = scalar_lea.hbm %s844_s3, 256 }
 0x159   : > { %p563_p4 = scmp.ne.s32.totalorder %s797_s21, %s562_s30  ;;  %p567_p9 = scmp.lt.u32.totalorder %s797_s21, %s844_s3 }
 0x15a   : > { %p568_p1 = scmp.lt.u32.totalorder %s566_s10, %s562_s30  ;;  %p570_p6 = scmp.lt.u32.totalorder %s562_s30, %s797_s21 }
 0x15b   : > { %p564_p5 = pnand %p563_p4, %p851_p11 }
 0x15c   : > { %p569_p3 = por %p568_p1, %p567_p9 }
 0x15d   : > { %p565_p7 = pneg %p564_p5 }
 0x15e   : > { %p571_p12 = por %p570_p6, %p569_p3 }
 0x160   : > { %p572_p13 = pnand %p571_p12, %p565_p7 }
 0x162   : > { %575 = shalt.err (!%p572_p13)
}
 0x163   : > { %472 = dma.vmem_to_hbm [thread:$0]  (%p851_p11), %s799_s13, 128, %s797_s21, %s304_s23  }
 0x164 PF: > { %s330_s5 = sand.u32 1, %s602_s14   ;;  %p852_p8 = scmp.ne.s32.totalorder %s849_s26, 0 }
 0x165   : > { %p853_p10 = scmp.ge.s32.totalorder %s614_s17, 2  ;;  %s331_s7 = scalar_lea.sflag [#allocation5], %s330_s5 }
 0x167   : > { %p479_p0 = pnand %p853_p10, %p852_p8 }
 0x169   : > { %597 = dma.done.wait (!%p479_p0), %s331_s7, 128  }
 0x16a   : > { %599 = vsyncadd (!%p479_p0), %s331_s7, 4294967168  ;;  %p17_p2 = scmp.ge.s32.totalorder %s668_s19, 4   ;;  %s854_s14 = smov %s606_s15 }
 0x16b   : > { %s855_s15 = smov %s610_s16  ;;  %s856_s16 = smov %s680_s22 }
 0x16c   : > { %s857_s17 = smov %s668_s19  ;;  %19 = sbr.rel (!%p17_p2) target bundleno = 7 (0x7), region = 77 }
 0x173   :  { %336 = vsyncpa [#allocation4], 1 }
 0x174   :  { %338 = vsyncpa [#allocation4 + $0x1], 1 }
 0x175   :  { %339 = vsyncpa [#allocation5], 1 }
 0x176   :  { %341 = vsyncpa [#allocation5 + $0x1], 1 }

</bundles_post_ra>
